<compile_context>
chip_gen: v7x
topology: tpu7x:2x2x1
jax: 0.10.0
libtpu: 0.0.40
codegen_flags: <defaults>
</compile_context>

<pallas_src>
import functools

import jax
import jax.numpy as jnp
from jax.experimental import pallas as pl
from jax.experimental.pallas import tpu as pltpu

NETYPE = 16  # number of edge types (etype_net(16, 64, 2) / mp_conv_v2(..., 16))


def _round_up(x, m):
    return (x + m - 1) // m * m


# ---------------------------------------------------------------------------
# Kernel 1: fused 1x1 conv (bf16 matmul) + bias (BN folded into W) + opt. ReLU
# ---------------------------------------------------------------------------
def _linear_kernel(x_ref, w_ref, b_ref, o_ref, *, relu):
    y = jnp.dot(x_ref[...].astype(jnp.bfloat16), w_ref[...],
                preferred_element_type=jnp.float32)
    y = y + b_ref[...]
    if relu:
        y = jnp.maximum(y, 0.0)
    o_ref[...] = y.astype(o_ref.dtype)


def linear_bn_act(x, w, b, relu=True, tm_max=512):
    """x: (M, Cin) f32; w: (Cin, Cout) bf16 (BN scale folded); b: (1, Cout) f32."""
    M, Cin = x.shape
    Cout = w.shape[1]
    tm = min(tm_max, _round_up(M, 8))
    Mp = _round_up(M, tm)
    if Mp != M:
        x = jnp.pad(x, ((0, Mp - M), (0, 0)))
    out = pl.pallas_call(
        functools.partial(_linear_kernel, relu=relu),
        out_shape=jax.ShapeDtypeStruct((Mp, Cout), jnp.float32),
        grid_spec=pltpu.PrefetchScalarGridSpec(
            num_scalar_prefetch=0,
            grid=(Mp // tm,),
            in_specs=[
                pl.BlockSpec((tm, Cin), lambda i: (i, 0)),
                pl.BlockSpec((Cin, Cout), lambda i: (0, 0)),
                pl.BlockSpec((1, Cout), lambda i: (0, 0)),
            ],
            out_specs=pl.BlockSpec((tm, Cout), lambda i: (i, 0)),
        ),
        compiler_params=pltpu.CompilerParams(dimension_semantics=("parallel",)),
    )(x, w, b)
    return out[:M] if Mp != M else out


# ---------------------------------------------------------------------------
# Kernel 2: fused etype_net = relu(x@W1 + b1) @ W2 + b2, rows in (b,k,n) order
# ---------------------------------------------------------------------------
def _etype_kernel(x_ref, w1_ref, b1_ref, w2_ref, b2_ref, o_ref):
    x = x_ref[...].astype(jnp.bfloat16)
    h = jnp.dot(x, w1_ref[...], preferred_element_type=jnp.float32)
    h = jnp.maximum(h + b1_ref[...], 0.0)
    y = jnp.dot(h.astype(jnp.bfloat16), w2_ref[...],
                preferred_element_type=jnp.float32)
    o_ref[...] = (y + b2_ref[...]).astype(o_ref.dtype)


def etype_net_fused(ef, p1, p2, tm_max=512):
    """ef: (M, 2) edge features in (b, k, n) row order; returns (M, T)."""
    M, cin = ef.shape
    hid = p1["w"].shape[1]
    t = p2["w"].shape[1]
    tm = min(tm_max, _round_up(M, 8))
    Mp = _round_up(M, tm)
    if Mp != M:
        ef = jnp.pad(ef, ((0, Mp - M), (0, 0)))
    out = pl.pallas_call(
        _etype_kernel,
        out_shape=jax.ShapeDtypeStruct((Mp, t), jnp.float32),
        grid_spec=pltpu.PrefetchScalarGridSpec(
            num_scalar_prefetch=0,
            grid=(Mp // tm,),
            in_specs=[
                pl.BlockSpec((tm, cin), lambda i: (i, 0)),
                pl.BlockSpec((cin, hid), lambda i: (0, 0)),
                pl.BlockSpec((1, hid), lambda i: (0, 0)),
                pl.BlockSpec((hid, t), lambda i: (0, 0)),
                pl.BlockSpec((1, t), lambda i: (0, 0)),
            ],
            out_specs=pl.BlockSpec((tm, t), lambda i: (i, 0)),
        ),
        compiler_params=pltpu.CompilerParams(dimension_semantics=("parallel",)),
    )(ef, p1["w"], p1["b"], p2["w"], p2["b"])
    return out[:M] if Mp != M else out


# ---------------------------------------------------------------------------
# Kernel 3: fused mp_conv_v2 (per batch element)
#   trans = relu(x @ Wmp + bmp)                 (bf16 VMEM scratch, no HBM trip)
#   out[n, c] = max_k  sum_t  etype[k*N+n, t] * trans[nn_idx[k*N+n], t*C + c]
# Gather via a single one-hot matmul; per-type combine as VPU FMAs.
# ---------------------------------------------------------------------------
def _mp_fused_kernel(x_ref, w_ref, b_ref, idx_ref, et_ref, o_ref, trans_ref,
                     *, n, k, t, c):
    # (1) per-batch trans conv (BN scale pre-folded into W)
    xb = x_ref[...].astype(jnp.bfloat16)                         # (N, Cin)
    tr = jnp.dot(xb, w_ref[...], preferred_element_type=jnp.float32)
    trans_ref[...] = jnp.maximum(tr + b_ref[...], 0.0).astype(jnp.bfloat16)

    # (2) neighbor gather + per-edge-type combine
    idx = idx_ref[...]                                           # (K*N, 1) int32
    iota = jax.lax.broadcasted_iota(jnp.int32, (k * n, n), 1)    # (K*N, N)
    onehot = (iota == idx).astype(jnp.bfloat16)                  # exact in bf16
    et = et_ref[...]                                             # (K*N, T) f32

    if c % 128 == 0:
        # one MXU gather matmul; T lane-aligned slices combined on the VPU
        gathered = jnp.dot(onehot, trans_ref[...],
                           preferred_element_type=jnp.float32)   # (K*N, T*C)
        acc = et[:, 0:1] * gathered[:, 0:c]
        for tt in range(1, t):
            acc = acc + et[:, tt:tt + 1] * gathered[:, tt * c:(tt + 1) * c]
    else:
        # C = 64: column slices of `gathered` would be lane-misaligned, so keep
        # the per-edge-type narrow-matmul form on these layers.
        et16 = et.astype(jnp.bfloat16)
        acc = jnp.dot(onehot * et16[:, 0:1], trans_ref[:, 0:c],
                      preferred_element_type=jnp.float32)
        for tt in range(1, t):
            acc = acc + jnp.dot(onehot * et16[:, tt:tt + 1],
                                trans_ref[:, tt * c:(tt + 1) * c],
                                preferred_element_type=jnp.float32)

    # (3) max over K neighbors: balanced tree reduction on a (K, N, C) view
    acc = acc.reshape(k, n, c)
    parts = [acc[i] for i in range(k)]
    while len(parts) > 1:
        nxt = [jnp.maximum(parts[i], parts[i + 1])
               for i in range(0, len(parts) - 1, 2)]
        if len(parts) % 2:
            nxt.append(parts[-1])
        parts = nxt
    o_ref[...] = parts[0].astype(o_ref.dtype)


def mp_conv_fused(x, w, b, nn_idx_t, etype_t, n, k, t, c):
    """x: (B, N, Cin) f32; w: (Cin, T*C) bf16; b: (1, T*C) f32;
       nn_idx_t: (B, K*N, 1) int32; etype_t: (B, K*N, T) f32."""
    B, _, cin = x.shape
    return pl.pallas_call(
        functools.partial(_mp_fused_kernel, n=n, k=k, t=t, c=c),
        out_shape=jax.ShapeDtypeStruct((B, n, c), jnp.float32),
        grid_spec=pltpu.PrefetchScalarGridSpec(
            num_scalar_prefetch=0,
            grid=(B,),
            in_specs=[
                pl.BlockSpec((None, n, cin), lambda bb: (bb, 0, 0)),
                pl.BlockSpec((cin, t * c), lambda bb: (0, 0)),
                pl.BlockSpec((1, t * c), lambda bb: (0, 0)),
                pl.BlockSpec((None, k * n, 1), lambda bb: (bb, 0, 0)),
                pl.BlockSpec((None, k * n, t), lambda bb: (bb, 0, 0)),
            ],
            out_specs=pl.BlockSpec((None, n, c), lambda bb: (bb, 0, 0)),
            scratch_shapes=[pltpu.VMEM((n, t * c), jnp.bfloat16)],
        ),
        compiler_params=pltpu.CompilerParams(dimension_semantics=("parallel",)),
    )(x, w, b, nn_idx_t, etype_t)


# ---------------------------------------------------------------------------
# Kernel 4: final affine conv (no bias/BN/ReLU) fused with L2-normalize + mask
# ---------------------------------------------------------------------------
def _affine_norm_mask_kernel(x_ref, w_ref, m_ref, o_ref):
    y = jnp.dot(x_ref[...].astype(jnp.bfloat16), w_ref[...],
                preferred_element_type=jnp.float32)              # (tm, Cout)
    nrm = jnp.sqrt(jnp.sum(y * y, axis=-1, keepdims=True))
    inv = m_ref[...] / jnp.maximum(nrm, 1e-12)                   # (tm, 1)
    o_ref[...] = (y * inv).astype(o_ref.dtype)


def affine_norm_mask(x, w, mask_col, tm_max=512):
    """x: (M, Cin) f32; w: (Cin, Cout) bf16; mask_col: (M, 1) f32."""
    M, Cin = x.shape
    Cout = w.shape[1]
    tm = min(tm_max, _round_up(M, 8))
    Mp = _round_up(M, tm)
    if Mp != M:
        x = jnp.pad(x, ((0, Mp - M), (0, 0)))
        mask_col = jnp.pad(mask_col, ((0, Mp - M), (0, 0)))
    out = pl.pallas_call(
        _affine_norm_mask_kernel,
        out_shape=jax.ShapeDtypeStruct((Mp, Cout), jnp.float32),
        grid_spec=pltpu.PrefetchScalarGridSpec(
            num_scalar_prefetch=0,
            grid=(Mp // tm,),
            in_specs=[
                pl.BlockSpec((tm, Cin), lambda i: (i, 0)),
                pl.BlockSpec((Cin, Cout), lambda i: (0, 0)),
                pl.BlockSpec((tm, 1), lambda i: (i, 0)),
            ],
            out_specs=pl.BlockSpec((tm, Cout), lambda i: (i, 0)),
        ),
        compiler_params=pltpu.CompilerParams(dimension_semantics=("parallel",)),
    )(x, w, mask_col)
    return out[:M] if Mp != M else out


# ---------------------------------------------------------------------------
# Deterministic parameter construction (Conv2d 1x1 + BatchNorm folded into W)
# ---------------------------------------------------------------------------
def init_linear_bn(key, cin, cout, with_bn=True, with_bias=True):
    kw, kb, kg, kbt, km, kv = jax.random.split(key, 6)
    w = jax.random.normal(kw, (cin, cout), jnp.float32) * (1.0 / (cin ** 0.5))
    conv_b = (jax.random.normal(kb, (cout,), jnp.float32) * 0.01
              if with_bias else jnp.zeros((cout,), jnp.float32))
    if with_bn:
        gamma = 1.0 + 0.1 * jax.random.normal(kg, (cout,), jnp.float32)
        beta = 0.1 * jax.random.normal(kbt, (cout,), jnp.float32)
        mean = 0.1 * jax.random.normal(km, (cout,), jnp.float32)
        var = 1.0 + 0.1 * jax.random.uniform(kv, (cout,), jnp.float32)
        s = gamma / jnp.sqrt(var + 1e-5)
        b = (conv_b - mean) * s + beta
        w = w * s[None, :]            # fold BN scale into the weight (offline)
    else:
        b = conv_b
    return {"w": w.astype(jnp.bfloat16), "b": b.reshape(1, cout)}


def init_params(key):
    keys = iter(jax.random.split(key, 32))
    p = {}
    # etype_net(16, 64, 2): conv(2->64)+BN+ReLU, conv(64->16)
    p["etype_conv1"] = init_linear_bn(next(keys), 2, 64)
    p["etype_conv2"] = init_linear_bn(next(keys), 64, NETYPE, with_bn=False)
    # mp_conv_v2(2, 64, 16): trans conv 2 -> 64*16
    p["mp_conv1"] = init_linear_bn(next(keys), 2, 64 * NETYPE)
    p["conv1"] = init_linear_bn(next(keys), 64, 128)
    p["res1"] = {"conv1": init_linear_bn(next(keys), 128, 64),
                 "mp": init_linear_bn(next(keys), 64, 64 * NETYPE),
                 "conv2": init_linear_bn(next(keys), 64, 128),
                 "nhid": 64}
    p["conv2"] = init_linear_bn(next(keys), 128, 128)
    p["mp_conv2"] = init_linear_bn(next(keys), 128, 128 * NETYPE)
    p["conv3"] = init_linear_bn(next(keys), 128, 256)
    p["res2"] = {"conv1": init_linear_bn(next(keys), 256, 128),
                 "mp": init_linear_bn(next(keys), 128, 128 * NETYPE),
                 "conv2": init_linear_bn(next(keys), 128, 256),
                 "nhid": 128}
    p["conv4"] = init_linear_bn(next(keys), 256, 256)     # with_global=False
    p["mp_conv3"] = init_linear_bn(next(keys), 256, 256 * NETYPE)
    p["conv5"] = init_linear_bn(next(keys), 256, 512)
    p["res3"] = {"conv1": init_linear_bn(next(keys), 512, 256),
                 "mp": init_linear_bn(next(keys), 256, 256 * NETYPE),
                 "conv2": init_linear_bn(next(keys), 256, 512),
                 "nhid": 256}
    p["affine"] = init_linear_bn(next(keys), 512, 512, with_bn=False, with_bias=False)
    return p


# ---------------------------------------------------------------------------
# feature_network forward
# ---------------------------------------------------------------------------
def feature_network_forward(params, pts, nn_idx, mask):
    """pts: (B, N, 2) f32; nn_idx: (B, N, K) int32; mask: (B, N) f32.
    Returns (B, 512, N), matching the PyTorch output (after .squeeze())."""
    B, N, _ = pts.shape
    K = nn_idx.shape[-1]
    T = NETYPE

    # get_nn_node_feature + get_edge_feature (2-channel glue gather in XLA)
    pts_knn = jax.vmap(lambda p, i: p[i])(pts, nn_idx)        # (B, N, K, 2)
    efeature = pts_knn - pts[:, :, None, :]                   # (B, N, K, 2)
    # row order r = k*N + n so the aggregation kernel sees contiguous K slices
    efeature_t = jnp.transpose(efeature, (0, 2, 1, 3)).reshape(B * K * N, 2)
    nn_idx_t = jnp.transpose(nn_idx, (0, 2, 1)).reshape(B, K * N, 1).astype(jnp.int32)

    # etype_net: two fused 1x1 convs, output already in (b, k, n) row order
    etype_t = etype_net_fused(efeature_t, params["etype_conv1"],
                              params["etype_conv2"]).reshape(B, K * N, T)

    def conv(x, p, relu=True):
        Bx, Nx, Cin = x.shape
        return linear_bn_act(x.reshape(Bx * Nx, Cin), p["w"], p["b"],
                             relu=relu).reshape(Bx, Nx, -1)

    def mp(x, p, cout):
        return mp_conv_fused(x, p["w"], p["b"], nn_idx_t, etype_t, N, K, T, cout)

    def gres(x, p):   # gconv_residual (with_residual=True)
        h = conv(x, p["conv1"])
        h = mp(h, p["mp"], p["nhid"])
        h = conv(h, p["conv2"])
        return h + x

    x = mp(pts, params["mp_conv1"], 64)          # mp_conv1 on raw points
    x = conv(x, params["conv1"])
    x = gres(x, params["res1"])
    x = conv(x, params["conv2"])
    x = mp(x, params["mp_conv2"], 128)
    x = conv(x, params["conv3"])
    x = gres(x, params["res2"])
    x = conv(x, params["conv4"])
    x = mp(x, params["mp_conv3"], 256)
    x = conv(x, params["conv5"])
    x = gres(x, params["res3"])

    # final affine (512->512, no bias/BN/ReLU) fused with L2-normalize + mask
    out = affine_norm_mask(x.reshape(B * N, -1), params["affine"]["w"],
                           mask.reshape(B * N, 1).astype(jnp.float32))
    out = out.reshape(B, N, 512)
    # kept channels-last internally; transpose only here to match PyTorch (B, C, N)
    return jnp.transpose(out, (0, 2, 1))


if __name__ == "__main__":
    key = jax.random.PRNGKey(0)
    k_pts, k_idx, k_mask, k_par = jax.random.split(key, 4)

    B, N, K = 2, 16, 8
    pts = jax.random.normal(k_pts, (B, N, 2), jnp.float32)
    nn_idx = jax.random.randint(k_idx, (B, N, K), 0, N, dtype=jnp.int32)
    mask = (jax.random.uniform(k_mask, (B, N)) > 0.2).astype(jnp.float32)

    params = init_params(k_par)

    out = feature_network_forward(params, pts, nn_idx, mask)
    out = jax.block_until_ready(out)

    assert out.shape == (B, 512, N), out.shape
    assert bool(jnp.all(jnp.isfinite(out)))
    print("KERNEL_OK")
</pallas_src>

<mosaic_0001>
module attributes {stable_mosaic.version = 11 : i64} {
  func.func @_etype_kernel(%arg0: i32, %arg1: memref<256x2xf32, #tpu.memory_space<vmem>>, %arg2: memref<2x64xbf16, #tpu.memory_space<vmem>>, %arg3: memref<1x64xf32, #tpu.memory_space<vmem>>, %arg4: memref<64x16xbf16, #tpu.memory_space<vmem>>, %arg5: memref<1x16xf32, #tpu.memory_space<vmem>>, %arg6: memref<256x16xf32, #tpu.memory_space<vmem>>) attributes {dimension_semantics = [#tpu.dimension_semantics<parallel>], iteration_bounds = array<i64: 1>, scalar_prefetch = 0 : i64, scratch_operands = 0 : i64, tpu.core_type = #tpu.core_type<tc>, window_params = [{transform_indices = @transform_0, window_bounds = array<i64: 256, 2>}, {pipeline_mode = #tpu.pipeline_mode<synchronous>, transform_indices = @transform_1, window_bounds = array<i64: 2, 64>}, {pipeline_mode = #tpu.pipeline_mode<synchronous>, transform_indices = @transform_2, window_bounds = array<i64: 1, 64>}, {pipeline_mode = #tpu.pipeline_mode<synchronous>, transform_indices = @transform_3, window_bounds = array<i64: 64, 16>}, {pipeline_mode = #tpu.pipeline_mode<synchronous>, transform_indices = @transform_4, window_bounds = array<i64: 1, 16>}, {transform_indices = @transform_5, window_bounds = array<i64: 256, 16>}]} {
    %c0 = arith.constant 0 : index
    %c0_0 = arith.constant 0 : index
    %0 = vector.load %arg1[%c0, %c0_0] : memref<256x2xf32, #tpu.memory_space<vmem>>, vector<256x2xf32>
    %1 = arith.truncf %0 : vector<256x2xf32> to vector<256x2xbf16>
    %c0_1 = arith.constant 0 : index
    %c0_2 = arith.constant 0 : index
    %2 = vector.load %arg2[%c0_1, %c0_2] : memref<2x64xbf16, #tpu.memory_space<vmem>>, vector<2x64xbf16>
    %cst = arith.constant dense<0.000000e+00> : vector<256x64xf32>
    %3 = tpu.matmul %1, %2, %cst {dimension_numbers = #tpu.dot_dimension_numbers<[1], [0], [0], [1], [0, 0, 1, 1], [], []>} : vector<256x2xbf16>, vector<2x64xbf16>, vector<256x64xf32> -> vector<256x64xf32>
    %c0_3 = arith.constant 0 : index
    %c0_4 = arith.constant 0 : index
    %4 = vector.load %arg3[%c0_3, %c0_4] : memref<1x64xf32, #tpu.memory_space<vmem>>, vector<1x64xf32>
    %5 = vector.broadcast %4 : vector<1x64xf32> to vector<256x64xf32>
    %6 = arith.addf %3, %5 : vector<256x64xf32>
    %cst_5 = arith.constant 0.000000e+00 : f32
    %7 = vector.broadcast %cst_5 : f32 to vector<256x64xf32>
    %8 = arith.maximumf %6, %7 : vector<256x64xf32>
    %9 = arith.truncf %8 : vector<256x64xf32> to vector<256x64xbf16>
    %c0_6 = arith.constant 0 : index
    %c0_7 = arith.constant 0 : index
    %10 = vector.load %arg4[%c0_6, %c0_7] : memref<64x16xbf16, #tpu.memory_space<vmem>>, vector<64x16xbf16>
    %cst_8 = arith.constant dense<0.000000e+00> : vector<256x16xf32>
    %11 = tpu.matmul %9, %10, %cst_8 {dimension_numbers = #tpu.dot_dimension_numbers<[1], [0], [0], [1], [0, 0, 1, 1], [], []>} : vector<256x64xbf16>, vector<64x16xbf16>, vector<256x16xf32> -> vector<256x16xf32>
    %c0_9 = arith.constant 0 : index
    %c0_10 = arith.constant 0 : index
    %12 = vector.load %arg5[%c0_9, %c0_10] : memref<1x16xf32, #tpu.memory_space<vmem>>, vector<1x16xf32>
    %13 = vector.broadcast %12 : vector<1x16xf32> to vector<256x16xf32>
    %14 = arith.addf %11, %13 : vector<256x16xf32>
    %c0_11 = arith.constant 0 : index
    %c0_12 = arith.constant 0 : index
    %15 = vector.load %arg6[%c0_11, %c0_12] : memref<256x16xf32, #tpu.memory_space<vmem>>, vector<256x16xf32>
    tpu.vector_store %arg6[%c0_11, %c0_12], %14 {strides = array<i32>} : memref<256x16xf32, #tpu.memory_space<vmem>>, vector<256x16xf32>,
    return
  }
  func.func @transform_0(%arg0: i32) -> (i32, i32) {
    %c0_i32 = arith.constant 0 : i32
    %c0_i32_0 = arith.constant 0 : i32
    return %arg0, %c0_i32 : i32, i32
  }
  func.func @transform_1(%arg0: i32) -> (i32, i32) {
    %c0_i32 = arith.constant 0 : i32
    %c0_i32_0 = arith.constant 0 : i32
    %c0_i32_1 = arith.constant 0 : i32
    return %c0_i32, %c0_i32_0 : i32, i32
  }
  func.func @transform_2(%arg0: i32) -> (i32, i32) {
    %c0_i32 = arith.constant 0 : i32
    %c0_i32_0 = arith.constant 0 : i32
    %c0_i32_1 = arith.constant 0 : i32
    return %c0_i32, %c0_i32_0 : i32, i32
  }
  func.func @transform_3(%arg0: i32) -> (i32, i32) {
    %c0_i32 = arith.constant 0 : i32
    %c0_i32_0 = arith.constant 0 : i32
    %c0_i32_1 = arith.constant 0 : i32
    return %c0_i32, %c0_i32_0 : i32, i32
  }
  func.func @transform_4(%arg0: i32) -> (i32, i32) {
    %c0_i32 = arith.constant 0 : i32
    %c0_i32_0 = arith.constant 0 : i32
    %c0_i32_1 = arith.constant 0 : i32
    return %c0_i32, %c0_i32_0 : i32, i32
  }
  func.func @transform_5(%arg0: i32) -> (i32, i32) {
    %c0_i32 = arith.constant 0 : i32
    %c0_i32_0 = arith.constant 0 : i32
    return %arg0, %c0_i32 : i32, i32
  }
}

</mosaic_0001>

<bundles_post_ra>
// kernel: tpu_custom_call.1
= control target key start
LH: loop header
LB: loop body
LE: loop exit
PB: predicated region body
PF: predicated region fallthrough
CT: control target
= control target key end

     0   :  { %vm126_vm0 = vcmask 1040384   ;;  %vm77_vm1 = vcmask 15360   ;;  %vm378_vm2 = vcmask 523264   ;;  %vm588_vm3 = vcmask 130048   ;;  %s1154_s1 = inlined_call_operand.vmem [shape: bf16[2,64], index: 1, kind: input, shape index: {}]   ;;  %s1155_s0 = inlined_call_operand.vmem [shape: f32[256,2], index: 0, kind: input, shape index: {}]   ;;  %s1156_s3 = inlined_call_operand.vmem [shape: bf16[64,16], index: 3, kind: input, shape index: {}]   ;;  %s1157_s2 = inlined_call_operand.vmem [shape: f32[1,64], index: 2, kind: input, shape index: {}]   ;;  %s1158_s4 = inlined_call_operand.vmem [shape: f32[1,16], index: 4, kind: input, shape index: {}]   ;;  %s1159_s5 = inlined_call_operand.vmem [shape: f32[256,16], index: 5, kind: output, shape index: {}]  }
   0x1   :  { %v69_v0 = vld [vmem:[%s1154_s1] sm:$0x1]  ;;  %v22_v2 = vld [vmem:[%s1155_s0 + $0x8] sm:$0xff]  ;;  %v23_v5 = vld [vmem:[%s1155_s0 + $0x10] sm:$0xff] }
   0x2   :  { %v21_v1 = vld [vmem:[%s1155_s0] sm:$0xff]  ;;  %774 = vmatprep.subr.msk.bf16.mxu0 %vm126_vm0, %v69_v0  ;;  %v128_v3 = vsel %vm126_vm0, %v69_v0, 0  ;;  %v24_v6 = vld [vmem:[%s1155_s0 + $0x18] sm:$0xff]  ;;  %v26_v9 = vld [vmem:[%s1155_s0 + $0x28] sm:$0xff] }
   0x3   :  { %v53_v4 = vpack.c.bf16 %v22_v2, %v21_v1  ;;  %v25_v7 = vld [vmem:[%s1155_s0 + $0x20] sm:$0xff]  ;;  %701 = vmatpush3.bf16.msra.mxu0 %v128_v3  ;;  %v54_v8 = vpack.c.bf16 %v24_v6, %v23_v5  ;;  %v27_v11 = vld [vmem:[%s1155_s0 + $0x30] sm:$0xff]  ;;  %v28_v12 = vld [vmem:[%s1155_s0 + $0x38] sm:$0xff] }
   0x4   :  { %v55_v10 = vpack.c.bf16 %v26_v9, %v25_v7  ;;  %v29_v13 = vld [vmem:[%s1155_s0 + $0x40] sm:$0xff]  ;;  %v30_v14 = vld [vmem:[%s1155_s0 + $0x48] sm:$0xff]  ;;  %v56_v15 = vpack.c.bf16 %v28_v12, %v27_v11  ;;  %v31_v19 = vld [vmem:[%s1155_s0 + $0x50] sm:$0xff] }
   0x5   :  { %702 = vmatprep.mubr.msk.bf16.mxu0 %vm77_vm1, %v53_v4  ;;  %v57_v16 = vpack.c.bf16 %v30_v14, %v29_v13  ;;  %v775_v17 = vld [vmem:[%s1156_s3] sm:$0xff]   ;;  %v776_v18 = vld [vmem:[%s1156_s3 + $0x8] sm:$0xff]   ;;  %v32_v20 = vld [vmem:[%s1155_s0 + $0x58] sm:$0xff] }
   0x6   :  { %703 = vmatmul.mubr.msk.bf16.vlgmr.msra.gmra.mrb[0].mxu0 %vm77_vm1, %v54_v8  ;;  %734 = vmatprep.subr.bf16.mxu1 %v775_v17  ;;  %v33_v21 = vld [vmem:[%s1155_s0 + $0x60] sm:$0xff]  ;;  %v34_v22 = vld [vmem:[%s1155_s0 + $0x68] sm:$0xff]  ;;  %v58_v23 = vpack.c.bf16 %v32_v20, %v31_v19  ;;  %v35_v25 = vld [vmem:[%s1155_s0 + $0x70] sm:$0xff] }
   0x7   :  { %706 = vmatprep.mubr.msk.bf16.mxu0 %vm77_vm1, %v55_v10  ;;  %735 = vmatpush3.bf16.msra.mxu1 %v775_v17  ;;  %v59_v24 = vpack.c.bf16 %v34_v22, %v33_v21  ;;  %v36_v26 = vld [vmem:[%s1155_s0 + $0x78] sm:$0xff]  ;;  %v37_v27 = vld [vmem:[%s1155_s0 + $0x80] sm:$0xff]  ;;  %v38_v28 = vld [vmem:[%s1155_s0 + $0x88] sm:$0xff] }
   0x8   :  { %736 = vmatprep.subr.bf16.mxu1 %v776_v18  ;;  %v60_v29 = vpack.c.bf16 %v36_v26, %v35_v25  ;;  %v61_v30 = vpack.c.bf16 %v38_v28, %v37_v27  ;;  %v39_v31 = vld [vmem:[%s1155_s0 + $0x90] sm:$0xff]  ;;  %v40_v32 = vld [vmem:[%s1155_s0 + $0x98] sm:$0xff]  ;;  %v41_v33 = vld [vmem:[%s1155_s0 + $0xa0] sm:$0xff] }
   0x9   :  { %v42_v34 = vld [vmem:[%s1155_s0 + $0xa8] sm:$0xff]  ;;  %v62_v35 = vpack.c.bf16 %v40_v32, %v39_v31  ;;  %v43_v37 = vld [vmem:[%s1155_s0 + $0xb0] sm:$0xff]  ;;  %v44_v38 = vld [vmem:[%s1155_s0 + $0xb8] sm:$0xff] }
   0xa   :  { %v63_v36 = vpack.c.bf16 %v42_v34, %v41_v33  ;;  %v45_v39 = vld [vmem:[%s1155_s0 + $0xc0] sm:$0xff]  ;;  %v46_v40 = vld [vmem:[%s1155_s0 + $0xc8] sm:$0xff]  ;;  %v64_v41 = vpack.c.bf16 %v44_v38, %v43_v37  ;;  %v47_v43 = vld [vmem:[%s1155_s0 + $0xd0] sm:$0xff] }
   0xb   :  { %737 = vmatpush3.bf16.msra.mxu1 %v776_v18  ;;  %v65_v42 = vpack.c.bf16 %v46_v40, %v45_v39  ;;  %v48_v44 = vld [vmem:[%s1155_s0 + $0xd8] sm:$0xff]  ;;  %v49_v45 = vld [vmem:[%s1155_s0 + $0xe0] sm:$0xff]  ;;  %v50_v46 = vld [vmem:[%s1155_s0 + $0xe8] sm:$0xff] }
   0xc   :  { %v66_v47 = vpack.c.bf16 %v48_v44, %v47_v43  ;;  %v67_v48 = vpack.c.bf16 %v50_v46, %v49_v45  ;;  %v51_v49 = vld [vmem:[%s1155_s0 + $0xf0] sm:$0xff]  ;;  %v52_v50 = vld [vmem:[%s1155_s0 + $0xf8] sm:$0xff]  ;;  %v939_v54 = vld [vmem:[%s1157_s2] ss:$0 sm:$0xff] }
   0xd   :  { %v68_v51 = vpack.c.bf16 %v52_v50, %v51_v49  ;;  %v777_v52 = vld [vmem:[%s1156_s3 + $0x10] sm:$0xff]   ;;  %v778_v53 = vld [vmem:[%s1156_s3 + $0x18] sm:$0xff]  }
   0xe   :  { %707 = vmatmul.mubr.msk.bf16.gmra.mrb[4].mxu0 %vm77_vm1, %v56_v15  ;;  %738 = vmatprep.subr.bf16.mxu1 %v777_v52 }
   0xf   :  { %710 = vmatprep.mubr.msk.bf16.mxu0 %vm77_vm1, %v57_v16  ;;  %739 = vmatpush3.bf16.msra.mxu1 %v777_v52 }
  0x10   :  { %740 = vmatprep.subr.bf16.mxu1 %v778_v53 }
  0x13   :  { %741 = vmatpush3.bf16.msra.mxu1 %v778_v53 }
  0x16   :  { %711 = vmatmul.mubr.msk.bf16.gmra.mrb[8].mxu0 %vm77_vm1, %v58_v23 }
  0x17   :  { %714 = vmatprep.mubr.msk.bf16.mxu0 %vm77_vm1, %v59_v24 }
  0x1e   :  { %715 = vmatmul.mubr.msk.bf16.gmra.mrb[12].mxu0 %vm77_vm1, %v60_v29 }
  0x1f   :  { %718 = vmatprep.mubr.msk.bf16.mxu0 %vm77_vm1, %v61_v30 }
  0x26   :  { %719 = vmatmul.mubr.msk.bf16.gmra.mrb[16].mxu0 %vm77_vm1, %v62_v35 }
  0x27   :  { %722 = vmatprep.mubr.msk.bf16.mxu0 %vm77_vm1, %v63_v36 }
  0x2e   :  { %723 = vmatmul.mubr.msk.bf16.gmra.mrb[20].mxu0 %vm77_vm1, %v64_v41 }
  0x2f   :  { %726 = vmatprep.mubr.msk.bf16.mxu0 %vm77_vm1, %v65_v42 }
  0x36   :  { %727 = vmatmul.mubr.msk.bf16.gmra.mrb[24].mxu0 %vm77_vm1, %v66_v47 }
  0x37   :  { %730 = vmatprep.mubr.msk.bf16.mxu0 %vm77_vm1, %v67_v48 }
  0x3e   :  { %731 = vmatmul.mubr.msk.bf16.gmra.mrb[28].mxu0 %vm77_vm1, %v68_v51 }
  0xd9   :  { %v704_v55 = vpop.f32.mrb[0].mxu0 }
  0xda   :  { %v173_v56 = vadd.f32 %v704_v55, %v939_v54  ;;  %v164_v57 = vpop.f32.mrb[1].mxu0 }
  0xdb   :  { %v165_v58 = vadd.f32 %v939_v54, %v164_v57  ;;  %v705_v59 = vpop.f32.mrb[2].mxu0 }
  0xdc   :  { %v176_v60 = vadd.f32 %v705_v59, %v939_v54  ;;  %v167_v61 = vpop.f32.mrb[3].mxu0  ;;  %v293_v63 = vmax.f32 %v173_v56, 0.0 }
  0xdd   :  { %v168_v62 = vadd.f32 %v939_v54, %v167_v61  ;;  %v291_v1 = vmax.f32 %v165_v58, 0.0 }
  0xde   :  { %v294_v0 = vmax.f32 %v176_v60, 0.0 }
  0xdf   :  { %v292_v2 = vmax.f32 %v168_v62, 0.0 }
  0xe0   :  { %v324_v3 = vpack.c.bf16 %v294_v0, %v293_v63 }
  0xe1   :  { %v708_v4 = vpop.f32.mrb[4].mxu0  ;;  %v323_v5 = vpack.c.bf16 %v292_v2, %v291_v1 }
  0xe2   :  { %v189_v6 = vadd.f32 %v708_v4, %v939_v54  ;;  %v180_v7 = vpop.f32.mrb[5].mxu0 }
  0xe3   :  { %v181_v8 = vadd.f32 %v939_v54, %v180_v7  ;;  %v709_v9 = vpop.f32.mrb[6].mxu0  ;;  %742 = vmatprep.mubr.msk.bf16.mxu1 %vm378_vm2, %v323_v5 }
  0xe4   :  { %v192_v10 = vadd.f32 %v709_v9, %v939_v54  ;;  %v183_v11 = vpop.f32.mrb[7].mxu0  ;;  %743 = vmatmul.mubr.msk.bf16.vlgmr.msra.gmra.mrb[0].mxu1 %vm378_vm2, %v324_v3  ;;  %v297_v13 = vmax.f32 %v189_v6, 0.0 }
  0xe5   :  { %v184_v12 = vadd.f32 %v939_v54, %v183_v11  ;;  %v295_v15 = vmax.f32 %v181_v8, 0.0 }
  0xe6   :  { %v298_v14 = vmax.f32 %v192_v10, 0.0 }
  0xe7   :  { %v296_v16 = vmax.f32 %v184_v12, 0.0 }
  0xe8   :  { %v326_v17 = vpack.c.bf16 %v298_v14, %v297_v13 }
  0xe9   :  { %v325_v18 = vpack.c.bf16 %v296_v16, %v295_v15  ;;  %v712_v19 = vpop.f32.mrb[8].mxu0 }
  0xea   :  { %v205_v20 = vadd.f32 %v712_v19, %v939_v54  ;;  %v196_v21 = vpop.f32.mrb[9].mxu0 }
  0xeb   :  { %v197_v22 = vadd.f32 %v939_v54, %v196_v21  ;;  %v713_v23 = vpop.f32.mrb[10].mxu0  ;;  %746 = vmatprep.mubr.msk.bf16.mxu1 %vm378_vm2, %v325_v18 }
  0xec   :  { %v208_v24 = vadd.f32 %v713_v23, %v939_v54  ;;  %v199_v25 = vpop.f32.mrb[11].mxu0  ;;  %747 = vmatmul.mubr.msk.bf16.gmra.mrb[4].mxu1 %vm378_vm2, %v326_v17  ;;  %v301_v27 = vmax.f32 %v205_v20, 0.0 }
  0xed   :  { %v200_v26 = vadd.f32 %v939_v54, %v199_v25  ;;  %v299_v29 = vmax.f32 %v197_v22, 0.0 }
  0xee   :  { %v302_v28 = vmax.f32 %v208_v24, 0.0 }
  0xef   :  { %v300_v30 = vmax.f32 %v200_v26, 0.0 }
  0xf0   :  { %v328_v31 = vpack.c.bf16 %v302_v28, %v301_v27 }
  0xf1   :  { %v327_v32 = vpack.c.bf16 %v300_v30, %v299_v29  ;;  %v716_v33 = vpop.f32.mrb[12].mxu0 }
  0xf2   :  { %v221_v34 = vadd.f32 %v716_v33, %v939_v54  ;;  %v212_v35 = vpop.f32.mrb[13].mxu0 }
  0xf3   :  { %v213_v36 = vadd.f32 %v939_v54, %v212_v35  ;;  %v717_v37 = vpop.f32.mrb[14].mxu0  ;;  %750 = vmatprep.mubr.msk.bf16.mxu1 %vm378_vm2, %v327_v32 }
  0xf4   :  { %v224_v38 = vadd.f32 %v717_v37, %v939_v54  ;;  %v215_v39 = vpop.f32.mrb[15].mxu0  ;;  %751 = vmatmul.mubr.msk.bf16.gmra.mrb[8].mxu1 %vm378_vm2, %v328_v31  ;;  %v305_v41 = vmax.f32 %v221_v34, 0.0 }
  0xf5   :  { %v216_v40 = vadd.f32 %v939_v54, %v215_v39  ;;  %v303_v43 = vmax.f32 %v213_v36, 0.0 }
  0xf6   :  { %v306_v42 = vmax.f32 %v224_v38, 0.0 }
  0xf7   :  { %v304_v44 = vmax.f32 %v216_v40, 0.0  ;;  %v992_v40 = vld [vmem:[%s1158_s4] ss:$0 sm:$0xff] }
  0xf8   :  { %v330_v45 = vpack.c.bf16 %v306_v42, %v305_v41 }
  0xf9   :  { %v329_v46 = vpack.c.bf16 %v304_v44, %v303_v43  ;;  %v720_v47 = vpop.f32.mrb[16].mxu0 }
  0xfa   :  { %v237_v48 = vadd.f32 %v720_v47, %v939_v54  ;;  %v228_v49 = vpop.f32.mrb[17].mxu0 }
  0xfb   :  { %v229_v50 = vadd.f32 %v939_v54, %v228_v49  ;;  %v721_v51 = vpop.f32.mrb[18].mxu0  ;;  %754 = vmatprep.mubr.msk.bf16.mxu1 %vm378_vm2, %v329_v46 }
  0xfc   :  { %v240_v52 = vadd.f32 %v721_v51, %v939_v54  ;;  %v231_v53 = vpop.f32.mrb[19].mxu0  ;;  %755 = vmatmul.mubr.msk.bf16.gmra.mrb[12].mxu1 %vm378_vm2, %v330_v45  ;;  %v309_v56 = vmax.f32 %v237_v48, 0.0 }
  0xfd   :  { %v232_v55 = vadd.f32 %v939_v54, %v231_v53  ;;  %v307_v58 = vmax.f32 %v229_v50, 0.0 }
  0xfe   :  { %v310_v57 = vmax.f32 %v240_v52, 0.0 }
  0xff   :  { %v308_v59 = vmax.f32 %v232_v55, 0.0 }
 0x100   :  { %v332_v60 = vpack.c.bf16 %v310_v57, %v309_v56 }
 0x101   :  { %v331_v61 = vpack.c.bf16 %v308_v59, %v307_v58  ;;  %v724_v62 = vpop.f32.mrb[20].mxu0 }
 0x102   :  { %v253_v63 = vadd.f32 %v724_v62, %v939_v54  ;;  %v244_v0 = vpop.f32.mrb[21].mxu0 }
 0x103   :  { %v245_v1 = vadd.f32 %v939_v54, %v244_v0  ;;  %v725_v2 = vpop.f32.mrb[22].mxu0  ;;  %758 = vmatprep.mubr.msk.bf16.mxu1 %vm378_vm2, %v331_v61 }
 0x104   :  { %v256_v3 = vadd.f32 %v725_v2, %v939_v54  ;;  %v247_v4 = vpop.f32.mrb[23].mxu0  ;;  %759 = vmatmul.mubr.msk.bf16.gmra.mrb[16].mxu1 %vm378_vm2, %v332_v60  ;;  %v313_v6 = vmax.f32 %v253_v63, 0.0 }
 0x105   :  { %v248_v5 = vadd.f32 %v939_v54, %v247_v4  ;;  %v311_v8 = vmax.f32 %v245_v1, 0.0 }
 0x106   :  { %v314_v7 = vmax.f32 %v256_v3, 0.0 }
 0x107   :  { %v312_v9 = vmax.f32 %v248_v5, 0.0 }
 0x108   :  { %v334_v10 = vpack.c.bf16 %v314_v7, %v313_v6 }
 0x109   :  { %v333_v11 = vpack.c.bf16 %v312_v9, %v311_v8  ;;  %v728_v12 = vpop.f32.mrb[24].mxu0 }
 0x10a   :  { %v269_v13 = vadd.f32 %v728_v12, %v939_v54  ;;  %v260_v14 = vpop.f32.mrb[25].mxu0 }
 0x10b   :  { %v261_v15 = vadd.f32 %v939_v54, %v260_v14  ;;  %v729_v16 = vpop.f32.mrb[26].mxu0  ;;  %762 = vmatprep.mubr.msk.bf16.mxu1 %vm378_vm2, %v333_v11 }
 0x10c   :  { %v272_v17 = vadd.f32 %v729_v16, %v939_v54  ;;  %v263_v18 = vpop.f32.mrb[27].mxu0  ;;  %763 = vmatmul.mubr.msk.bf16.gmra.mrb[20].mxu1 %vm378_vm2, %v334_v10  ;;  %v317_v20 = vmax.f32 %v269_v13, 0.0 }
 0x10d   :  { %v264_v19 = vadd.f32 %v939_v54, %v263_v18  ;;  %v315_v22 = vmax.f32 %v261_v15, 0.0 }
 0x10e   :  { %v318_v21 = vmax.f32 %v272_v17, 0.0 }
 0x10f   :  { %v316_v23 = vmax.f32 %v264_v19, 0.0 }
 0x110   :  { %v336_v24 = vpack.c.bf16 %v318_v21, %v317_v20 }
 0x111   :  { %v335_v25 = vpack.c.bf16 %v316_v23, %v315_v22  ;;  %v732_v26 = vpop.f32.mrb[28].mxu0 }
 0x112   :  { %v285_v27 = vadd.f32 %v732_v26, %v939_v54  ;;  %v276_v28 = vpop.f32.mrb[29].mxu0 }
 0x113   :  { %v277_v29 = vadd.f32 %v939_v54, %v276_v28  ;;  %v733_v30 = vpop.f32.mrb[30].mxu0  ;;  %766 = vmatprep.mubr.msk.bf16.mxu1 %vm378_vm2, %v335_v25 }
 0x114   :  { %v288_v31 = vadd.f32 %v733_v30, %v939_v54  ;;  %v279_v32 = vpop.f32.mrb[31].mxu0  ;;  %767 = vmatmul.mubr.msk.bf16.gmra.mrb[24].mxu1 %vm378_vm2, %v336_v24  ;;  %v321_v34 = vmax.f32 %v285_v27, 0.0 }
 0x115   :  { %v280_v33 = vadd.f32 %v939_v54, %v279_v32  ;;  %v319_v36 = vmax.f32 %v277_v29, 0.0 }
 0x116   :  { %v322_v35 = vmax.f32 %v288_v31, 0.0 }
 0x117   :  { %v320_v37 = vmax.f32 %v280_v33, 0.0 }
 0x118   :  { %v338_v38 = vpack.c.bf16 %v322_v35, %v321_v34 }
 0x119   :  { %v337_v39 = vpack.c.bf16 %v320_v37, %v319_v36 }
 0x11b   :  { %770 = vmatprep.mubr.msk.bf16.mxu1 %vm378_vm2, %v337_v39 }
 0x11c   :  { %771 = vmatmul.mubr.msk.bf16.gmra.mrb[28].mxu1 %vm378_vm2, %v338_v38 }
 0x1b7   :  { %v744_v41 = vpop.f32.mrb[0].mxu1 }
 0x1b8   :  { %v470_v42 = vadd.f32 %v744_v41, %v992_v40  ;;  %v461_v54 = vpop.f32.mrb[1].mxu1 }
 0x1b9   :  { %v462_v43 = vadd.f32 %v992_v40, %v461_v54  ;;  %v745_v44 = vpop.f32.mrb[2].mxu1 }
 0x1ba   :  { %591 = vst.msk [vmem:[%s1159_s5 + $0x10] sm:$0xff] %vm588_vm3, %v470_v42  ;;  %v473_v45 = vadd.f32 %v745_v44, %v992_v40  ;;  %v464_v46 = vpop.f32.mrb[3].mxu1 }
 0x1bb   :  { %589 = vst.msk [vmem:[%s1159_s5] sm:$0xff] %vm588_vm3, %v462_v43  ;;  %v465_v47 = vadd.f32 %v992_v40, %v464_v46 }
 0x1bc   :  { %592 = vst.msk [vmem:[%s1159_s5 + $0x18] sm:$0xff] %vm588_vm3, %v473_v45 }
 0x1bd   :  { %590 = vst.msk [vmem:[%s1159_s5 + $0x8] sm:$0xff] %vm588_vm3, %v465_v47 }
 0x1bf   :  { %v748_v48 = vpop.f32.mrb[4].mxu1 }
 0x1c0   :  { %v486_v49 = vadd.f32 %v748_v48, %v992_v40  ;;  %v477_v50 = vpop.f32.mrb[5].mxu1 }
 0x1c1   :  { %v478_v51 = vadd.f32 %v992_v40, %v477_v50  ;;  %v749_v52 = vpop.f32.mrb[6].mxu1 }
 0x1c2   :  { %595 = vst.msk [vmem:[%s1159_s5 + $0x30] sm:$0xff] %vm588_vm3, %v486_v49  ;;  %v489_v53 = vadd.f32 %v749_v52, %v992_v40  ;;  %v480_v55 = vpop.f32.mrb[7].mxu1 }
 0x1c3   :  { %593 = vst.msk [vmem:[%s1159_s5 + $0x20] sm:$0xff] %vm588_vm3, %v478_v51  ;;  %v481_v56 = vadd.f32 %v992_v40, %v480_v55 }
 0x1c4   :  { %596 = vst.msk [vmem:[%s1159_s5 + $0x38] sm:$0xff] %vm588_vm3, %v489_v53 }
 0x1c5   :  { %594 = vst.msk [vmem:[%s1159_s5 + $0x28] sm:$0xff] %vm588_vm3, %v481_v56 }
 0x1c7   :  { %v752_v57 = vpop.f32.mrb[8].mxu1 }
 0x1c8   :  { %v502_v58 = vadd.f32 %v752_v57, %v992_v40  ;;  %v493_v59 = vpop.f32.mrb[9].mxu1 }
 0x1c9   :  { %v494_v60 = vadd.f32 %v992_v40, %v493_v59  ;;  %v753_v61 = vpop.f32.mrb[10].mxu1 }
 0x1ca   :  { %599 = vst.msk [vmem:[%s1159_s5 + $0x50] sm:$0xff] %vm588_vm3, %v502_v58  ;;  %v505_v62 = vadd.f32 %v753_v61, %v992_v40  ;;  %v496_v63 = vpop.f32.mrb[11].mxu1 }
 0x1cb   :  { %597 = vst.msk [vmem:[%s1159_s5 + $0x40] sm:$0xff] %vm588_vm3, %v494_v60  ;;  %v497_v0 = vadd.f32 %v992_v40, %v496_v63 }
 0x1cc   :  { %600 = vst.msk [vmem:[%s1159_s5 + $0x58] sm:$0xff] %vm588_vm3, %v505_v62 }
 0x1cd   :  { %598 = vst.msk [vmem:[%s1159_s5 + $0x48] sm:$0xff] %vm588_vm3, %v497_v0 }
 0x1cf   :  { %v756_v1 = vpop.f32.mrb[12].mxu1 }
 0x1d0   :  { %v518_v2 = vadd.f32 %v756_v1, %v992_v40  ;;  %v509_v3 = vpop.f32.mrb[13].mxu1 }
 0x1d1   :  { %v510_v4 = vadd.f32 %v992_v40, %v509_v3  ;;  %v757_v5 = vpop.f32.mrb[14].mxu1 }
 0x1d2   :  { %603 = vst.msk [vmem:[%s1159_s5 + $0x70] sm:$0xff] %vm588_vm3, %v518_v2  ;;  %v521_v6 = vadd.f32 %v757_v5, %v992_v40  ;;  %v512_v7 = vpop.f32.mrb[15].mxu1 }
 0x1d3   :  { %601 = vst.msk [vmem:[%s1159_s5 + $0x60] sm:$0xff] %vm588_vm3, %v510_v4  ;;  %v513_v8 = vadd.f32 %v992_v40, %v512_v7 }
 0x1d4   :  { %604 = vst.msk [vmem:[%s1159_s5 + $0x78] sm:$0xff] %vm588_vm3, %v521_v6 }
 0x1d5   :  { %602 = vst.msk [vmem:[%s1159_s5 + $0x68] sm:$0xff] %vm588_vm3, %v513_v8 }
 0x1d7   :  { %v760_v9 = vpop.f32.mrb[16].mxu1 }
 0x1d8   :  { %v534_v10 = vadd.f32 %v760_v9, %v992_v40  ;;  %v525_v11 = vpop.f32.mrb[17].mxu1 }
 0x1d9   :  { %v526_v12 = vadd.f32 %v992_v40, %v525_v11  ;;  %v761_v13 = vpop.f32.mrb[18].mxu1 }
 0x1da   :  { %607 = vst.msk [vmem:[%s1159_s5 + $0x90] sm:$0xff] %vm588_vm3, %v534_v10  ;;  %v537_v14 = vadd.f32 %v761_v13, %v992_v40  ;;  %v528_v15 = vpop.f32.mrb[19].mxu1 }
 0x1db   :  { %605 = vst.msk [vmem:[%s1159_s5 + $0x80] sm:$0xff] %vm588_vm3, %v526_v12  ;;  %v529_v16 = vadd.f32 %v992_v40, %v528_v15 }
 0x1dc   :  { %608 = vst.msk [vmem:[%s1159_s5 + $0x98] sm:$0xff] %vm588_vm3, %v537_v14 }
 0x1dd   :  { %606 = vst.msk [vmem:[%s1159_s5 + $0x88] sm:$0xff] %vm588_vm3, %v529_v16 }
 0x1df   :  { %v764_v17 = vpop.f32.mrb[20].mxu1 }
 0x1e0   :  { %v550_v18 = vadd.f32 %v764_v17, %v992_v40  ;;  %v541_v19 = vpop.f32.mrb[21].mxu1 }
 0x1e1   :  { %v542_v20 = vadd.f32 %v992_v40, %v541_v19  ;;  %v765_v21 = vpop.f32.mrb[22].mxu1 }
 0x1e2   :  { %611 = vst.msk [vmem:[%s1159_s5 + $0xb0] sm:$0xff] %vm588_vm3, %v550_v18  ;;  %v553_v22 = vadd.f32 %v765_v21, %v992_v40  ;;  %v544_v23 = vpop.f32.mrb[23].mxu1 }
 0x1e3   :  { %609 = vst.msk [vmem:[%s1159_s5 + $0xa0] sm:$0xff] %vm588_vm3, %v542_v20  ;;  %v545_v24 = vadd.f32 %v992_v40, %v544_v23 }
 0x1e4   :  { %612 = vst.msk [vmem:[%s1159_s5 + $0xb8] sm:$0xff] %vm588_vm3, %v553_v22 }
 0x1e5   :  { %610 = vst.msk [vmem:[%s1159_s5 + $0xa8] sm:$0xff] %vm588_vm3, %v545_v24 }
 0x1e7   :  { %v768_v25 = vpop.f32.mrb[24].mxu1 }
 0x1e8   :  { %v566_v26 = vadd.f32 %v768_v25, %v992_v40  ;;  %v557_v27 = vpop.f32.mrb[25].mxu1 }
 0x1e9   :  { %v558_v28 = vadd.f32 %v992_v40, %v557_v27  ;;  %v769_v29 = vpop.f32.mrb[26].mxu1 }
 0x1ea   :  { %615 = vst.msk [vmem:[%s1159_s5 + $0xd0] sm:$0xff] %vm588_vm3, %v566_v26  ;;  %v569_v30 = vadd.f32 %v769_v29, %v992_v40  ;;  %v560_v31 = vpop.f32.mrb[27].mxu1 }
 0x1eb   :  { %613 = vst.msk [vmem:[%s1159_s5 + $0xc0] sm:$0xff] %vm588_vm3, %v558_v28  ;;  %v561_v32 = vadd.f32 %v992_v40, %v560_v31 }
 0x1ec   :  { %616 = vst.msk [vmem:[%s1159_s5 + $0xd8] sm:$0xff] %vm588_vm3, %v569_v30 }
 0x1ed   :  { %614 = vst.msk [vmem:[%s1159_s5 + $0xc8] sm:$0xff] %vm588_vm3, %v561_v32 }
 0x1ef   :  { %v772_v33 = vpop.f32.mrb[28].mxu1 }
 0x1f0   :  { %v582_v34 = vadd.f32 %v772_v33, %v992_v40  ;;  %v573_v35 = vpop.f32.mrb[29].mxu1 }
 0x1f1   :  { %v574_v36 = vadd.f32 %v992_v40, %v573_v35  ;;  %v773_v37 = vpop.f32.mrb[30].mxu1 }
 0x1f2   :  { %619 = vst.msk [vmem:[%s1159_s5 + $0xf0] sm:$0xff] %vm588_vm3, %v582_v34  ;;  %v585_v38 = vadd.f32 %v773_v37, %v992_v40  ;;  %v576_v39 = vpop.f32.mrb[31].mxu1 }
 0x1f3   :  { %617 = vst.msk [vmem:[%s1159_s5 + $0xe0] sm:$0xff] %vm588_vm3, %v574_v36  ;;  %v577_v41 = vadd.f32 %v992_v40, %v576_v39 }
 0x1f4   :  { %620 = vst.msk [vmem:[%s1159_s5 + $0xf8] sm:$0xff] %vm588_vm3, %v585_v38 }
 0x1f5   :  { %618 = vst.msk [vmem:[%s1159_s5 + $0xe8] sm:$0xff] %vm588_vm3, %v577_v41 }

</bundles_post_ra>
